<compile_context>
chip_gen: v7x
topology: tpu7x:2x2x1
jax: 0.10.0
libtpu: 0.0.40
codegen_flags: <defaults>
</compile_context>

<pallas_src>
import functools

import jax
import jax.numpy as jnp
from jax.experimental import pallas as pl
from jax.experimental.pallas import tpu as pltpu


def _round_up(x, m):
    return (x + m - 1) // m * m


def patch_embed_kernel(xp_ref, w_ref, p_ref, o_ref, *, inv_n, eps, add_bias, mask_pad):
    # xp_ref: (tm, Kp)  compute dtype (bf16 default, f32 strict)
    # w_ref : (Kp, Np)  compute dtype
    # p_ref : (4, Np)   f32 rows = [bias, gamma, beta, valid-lane mask]
    # o_ref : (tm, Np)  output dtype
    y = jnp.dot(xp_ref[...], w_ref[...], preferred_element_type=jnp.float32)
    if add_bias:
        y = y + p_ref[0:1, :]          # only when bias is not folded into the matmul

    # LayerNorm statistics over the *true* embed_dim. Padded N lanes of y are
    # exactly 0 (zero weight columns, zero bias), so summing all Np lanes and
    # dividing by 1/embed_dim gives the true mean.
    mean = jnp.sum(y, axis=-1, keepdims=True) * inv_n
    d = y - mean
    if mask_pad:
        d = d * p_ref[3:4, :]          # padded lanes hold -mean; zero them for var
    # Two-pass variance (cancellation-safe vs. E[y^2] - mean^2).
    var = jnp.sum(d * d, axis=-1, keepdims=True) * inv_n
    r = jax.lax.rsqrt(var + eps)

    o_ref[...] = (d * r * p_ref[1:2, :] + p_ref[2:3, :]).astype(o_ref.dtype)


def _vmem_budget_bytes():
    cap = 64 << 20
    try:
        info = pltpu.get_tpu_info()
        cap = int(getattr(info, "vmem_capacity_bytes", cap) or cap)
    except Exception:
        pass
    # ~0.75x capacity: ~96 MiB on v5e/v6e (128 MiB VMEM), ~48 MiB on v7x (64 MiB).
    return max(32 << 20, min(cap * 3 // 4, 96 << 20))


def _pick_tile_m(M, Kp, Np, cb, ob, tile_m, budget):
    # Weight + params are grid-constant but still double-buffered by the default
    # pipeline; row tiles of xp/out are double-buffered; f32 intermediates (~3
    # tile-rows) live in vregs/VMEM.
    fixed = 2 * Kp * Np * cb + 2 * 4 * Np * 4
    per_row = 2 * (Kp * cb + Np * ob) + 3 * Np * 4
    avail = max(budget - fixed, 8 * per_row)
    tm = min(int(tile_m), int(avail // per_row), _round_up(M, 8))
    if tm >= 256:
        tm = (tm // 256) * 256         # MXU-edge aligned row tiles
    else:
        tm = max(8, (tm // 8) * 8)
    # Guarantee >=2 grid steps when there is enough work so the ("parallel",)
    # row axis can be split across both v7x TensorCores.
    if M > 256 and pl.cdiv(M, tm) < 2:
        tm = _round_up(pl.cdiv(M, 2), 256)
    return tm


def patch_embed(x, weight, bias, gamma, beta, patch_size, *,
                compute_dtype=jnp.bfloat16,
                out_dtype=None,
                tile_m=1024,
                vmem_budget_bytes=None,
                fuse_patchify_into_dma=False):
    """x: [B, C, H, W] (NCHW). weight: [embed_dim, C, ph, pw] (torch conv layout).

    Returns (out [B, num_patches, embed_dim], (H//ph, W//pw)).

    compute_dtype: MXU operand dtype (bf16 default; float32 = strict mode).
    Accumulation and LayerNorm math are always f32.  out_dtype defaults to
    x.dtype (pass jnp.bfloat16 to also halve the output HBM write).
    """
    B, C, H, W = x.shape
    ph, pw = patch_size
    assert H % ph == 0 and W % pw == 0
    Hp, Wp = H // ph, W // pw
    P = Hp * Wp
    E = weight.shape[0]
    K = C * ph * pw
    M = B * P

    cdt = jnp.dtype(compute_dtype)
    odt = jnp.dtype(out_dtype) if out_dtype is not None else jnp.dtype(x.dtype)
    cb, ob = cdt.itemsize, odt.itemsize

    K_pad = _round_up(K, 128)
    N_pad = _round_up(E, 128)
    fold_bias = K_pad > K              # a zero lane-pad column is free: carry the bias
    mask_pad = N_pad > E

    if vmem_budget_bytes is None:
        vmem_budget_bytes = _vmem_budget_bytes()
    tm = _pick_tile_m(M, K_pad, N_pad, cb, ob, tile_m, vmem_budget_bytes)
    grid = (pl.cdiv(M, tm),)           # ragged last tile handled by Pallas; no M pad

    # --- patchify: (B,C,H,W) -> (B,Hp,Wp,C,ph,pw) -> (M, K), cast to compute dtype.
    # Emitted as a single fused XLA pass directly in the (narrow) compute dtype.
    xp = x.reshape(B, C, Hp, ph, Wp, pw)
    xp = jnp.transpose(xp, (0, 2, 4, 1, 3, 5)).reshape(M, K).astype(cdt)
    if K_pad > K:
        # Padded K columns: column K is the ones column carrying the bias, the
        # rest are zeros (K-axis padding must stay well-defined — see review).
        aug = jnp.zeros((K_pad - K,), cdt).at[0].set(1)
        xp = jnp.concatenate([xp, jnp.broadcast_to(aug, (M, K_pad - K))], axis=1)

    # Conv weight (E, C, ph, pw) -> (K, E); append bias row when folded; lane-pad.
    w2d = jnp.transpose(weight.reshape(E, K)).astype(jnp.float32)
    if fold_bias:
        w2d = jnp.concatenate([w2d, bias.astype(jnp.float32)[None, :]], axis=0)
    w2d = jnp.pad(w2d, ((0, K_pad - w2d.shape[0]), (0, N_pad - E))).astype(cdt)

    # bias / gamma / beta / valid-lane mask folded into one (4, N_pad) f32 array.
    def _pad_n(v):
        return jnp.pad(v.astype(jnp.float32), (0, N_pad - E))

    valid = (jnp.arange(N_pad) < E).astype(jnp.float32)
    params = jnp.stack([_pad_n(bias), _pad_n(gamma), _pad_n(beta), valid], axis=0)

    kernel = functools.partial(
        patch_embed_kernel,
        inv_n=1.0 / float(E), eps=1e-5,
        add_bias=not fold_bias, mask_pad=mask_pad)

    # Opt-in, unvalidated (see review): let XLA fuse the patchify producer into
    # the Pallas input DMA for the xp operand only.
    allow_fusion = [True, False, False] if fuse_patchify_into_dma else None

    out = pl.pallas_call(
        kernel,
        out_shape=jax.ShapeDtypeStruct((M, N_pad), odt),
        grid_spec=pltpu.PrefetchScalarGridSpec(
            num_scalar_prefetch=0,
            grid=grid,
            in_specs=[
                pl.BlockSpec((tm, K_pad), lambda i: (i, 0)),
                pl.BlockSpec((K_pad, N_pad), lambda i: (0, 0)),
                pl.BlockSpec((4, N_pad), lambda i: (0, 0)),
            ],
            out_specs=pl.BlockSpec((tm, N_pad), lambda i: (i, 0)),
        ),
        compiler_params=pltpu.CompilerParams(
            dimension_semantics=("parallel",),
            vmem_limit_bytes=int(vmem_budget_bytes),
            allow_input_fusion=allow_fusion,
        ),
    )(xp, w2d, params)

    if mask_pad:
        out = out[:, :E]               # only when embed_dim is not lane-aligned
    return out.reshape(B, P, E), (Hp, Wp)


def reference(x, weight, bias, gamma, beta, patch_size):
    """Pure-JAX reference mirroring the PyTorch forward."""
    ph, pw = patch_size
    y = jax.lax.conv_general_dilated(
        x, weight, window_strides=(ph, pw), padding="VALID",
        dimension_numbers=("NCHW", "OIHW", "NCHW"))
    y = y + bias.reshape(1, -1, 1, 1)
    B, E, Hp, Wp = y.shape
    y = y.reshape(B, E, Hp * Wp).transpose(0, 2, 1)  # flatten(2).transpose(1,2)
    mean = jnp.mean(y, axis=-1, keepdims=True)
    var = jnp.mean((y - mean) ** 2, axis=-1, keepdims=True)
    y = (y - mean) / jnp.sqrt(var + 1e-5)
    return y * gamma + beta, (Hp, Wp)


if __name__ == "__main__":
    def run_case(B, C, H, W, ph, pw, E, key):
        kx, kw, kb, kg, kbe = jax.random.split(key, 5)
        x = jax.random.normal(kx, (B, C, H, W), dtype=jnp.float32)
        weight = jax.random.normal(kw, (E, C, ph, pw), dtype=jnp.float32) * 0.05
        bias = jax.random.normal(kb, (E,), dtype=jnp.float32) * 0.01
        gamma = 1.0 + 0.1 * jax.random.normal(kg, (E,), dtype=jnp.float32)
        beta = 0.1 * jax.random.normal(kbe, (E,), dtype=jnp.float32)

        ref, (Hr, Wr) = reference(x, weight, bias, gamma, beta, (ph, pw))

        # Strict f32 path: tight accuracy check.
        o32, (Hp, Wp) = patch_embed(x, weight, bias, gamma, beta, (ph, pw),
                                    compute_dtype=jnp.float32)
        o32 = jax.block_until_ready(o32)
        assert o32.shape == (B, (H // ph) * (W // pw), E)
        assert (Hp, Wp) == (Hr, Wr) == (H // ph, W // pw)
        err32 = float(jnp.max(jnp.abs(o32 - ref)))
        assert jnp.allclose(o32, ref, atol=1e-4, rtol=1e-4), err32

        # Default bf16 MXU-operand path (f32 accumulation + f32 LayerNorm math).
        obf, _ = patch_embed(x, weight, bias, gamma, beta, (ph, pw))
        obf = jax.block_until_ready(obf)
        errbf = float(jnp.max(jnp.abs(obf - ref)))
        assert jnp.allclose(obf, ref, atol=7.5e-2, rtol=7.5e-2), errbf

    key = jax.random.PRNGKey(0)
    k1, k2 = jax.random.split(key)
    # Case 1 (module-consistent small shapes): K=64, E=32 — exercises the K lane
    # pad + bias folding + valid-lane-masked variance + output slice path.
    run_case(B=2, C=4, H=16, W=16, ph=4, pw=4, E=32, key=k1)
    # Case 2: K=128, E=128 — exercises the fully lane-aligned fast path
    # (no pads, no output slice, in-kernel bias add).
    run_case(B=2, C=8, H=16, W=16, ph=4, pw=4, E=128, key=k2)

    print("KERNEL_OK")
</pallas_src>

<mosaic_0001>
module attributes {stable_mosaic.version = 11 : i64} {
  func.func @patch_embed_kernel(%arg0: i32, %arg1: memref<32x128xf32, #tpu.memory_space<vmem>>, %arg2: memref<128x128xf32, #tpu.memory_space<vmem>>, %arg3: memref<4x128xf32, #tpu.memory_space<vmem>>, %arg4: memref<32x128xf32, #tpu.memory_space<vmem>>) attributes {dimension_semantics = [#tpu.dimension_semantics<parallel>], iteration_bounds = array<i64: 1>, scalar_prefetch = 0 : i64, scratch_operands = 0 : i64, tpu.core_type = #tpu.core_type<tc>, window_params = [{transform_indices = @transform_0, window_bounds = array<i64: 32, 128>}, {pipeline_mode = #tpu.pipeline_mode<synchronous>, transform_indices = @transform_1, window_bounds = array<i64: 128, 128>}, {pipeline_mode = #tpu.pipeline_mode<synchronous>, transform_indices = @transform_2, window_bounds = array<i64: 4, 128>}, {transform_indices = @transform_3, window_bounds = array<i64: 32, 128>}]} {
    %c0 = arith.constant 0 : index
    %c0_0 = arith.constant 0 : index
    %0 = vector.load %arg1[%c0, %c0_0] : memref<32x128xf32, #tpu.memory_space<vmem>>, vector<32x128xf32>
    %c0_1 = arith.constant 0 : index
    %c0_2 = arith.constant 0 : index
    %1 = vector.load %arg2[%c0_1, %c0_2] : memref<128x128xf32, #tpu.memory_space<vmem>>, vector<128x128xf32>
    %cst = arith.constant dense<0.000000e+00> : vector<32x128xf32>
    %2 = tpu.matmul %0, %1, %cst {dimension_numbers = #tpu.dot_dimension_numbers<[1], [0], [0], [1], [0, 0, 1, 1], [], []>} : vector<32x128xf32>, vector<128x128xf32>, vector<32x128xf32> -> vector<32x128xf32>
    %cst_3 = arith.constant dense<0.000000e+00> : vector<32xf32>
    %3 = vector.multi_reduction <add>, %2, %cst_3 [1] : vector<32x128xf32> to vector<32xf32>
    %4 = vector.shape_cast %3 : vector<32xf32> to vector<32x1xf32>
    %cst_4 = arith.constant 3.125000e-02 : f32
    %5 = vector.broadcast %cst_4 : f32 to vector<32x1xf32>
    %6 = arith.mulf %4, %5 : vector<32x1xf32>
    %7 = vector.broadcast %6 : vector<32x1xf32> to vector<32x128xf32>
    %8 = arith.subf %2, %7 : vector<32x128xf32>
    %c3 = arith.constant 3 : index
    %c0_5 = arith.constant 0 : index
    %9 = vector.load %arg3[%c3, %c0_5] : memref<4x128xf32, #tpu.memory_space<vmem>>, vector<1x128xf32>
    %10 = vector.broadcast %9 : vector<1x128xf32> to vector<32x128xf32>
    %11 = arith.mulf %8, %10 : vector<32x128xf32>
    %12 = arith.mulf %11, %11 : vector<32x128xf32>
    %cst_6 = arith.constant dense<0.000000e+00> : vector<32xf32>
    %13 = vector.multi_reduction <add>, %12, %cst_6 [1] : vector<32x128xf32> to vector<32xf32>
    %14 = vector.shape_cast %13 : vector<32xf32> to vector<32x1xf32>
    %cst_7 = arith.constant 3.125000e-02 : f32
    %15 = vector.broadcast %cst_7 : f32 to vector<32x1xf32>
    %16 = arith.mulf %14, %15 : vector<32x1xf32>
    %cst_8 = arith.constant 9.99999974E-6 : f32
    %17 = vector.broadcast %cst_8 : f32 to vector<32x1xf32>
    %18 = arith.addf %16, %17 : vector<32x1xf32>
    %19 = math.rsqrt %18 : vector<32x1xf32>
    %20 = vector.broadcast %19 : vector<32x1xf32> to vector<32x128xf32>
    %21 = arith.mulf %11, %20 : vector<32x128xf32>
    %c1 = arith.constant 1 : index
    %c0_9 = arith.constant 0 : index
    %22 = vector.load %arg3[%c1, %c0_9] : memref<4x128xf32, #tpu.memory_space<vmem>>, vector<1x128xf32>
    %23 = vector.broadcast %22 : vector<1x128xf32> to vector<32x128xf32>
    %24 = arith.mulf %21, %23 : vector<32x128xf32>
    %c2 = arith.constant 2 : index
    %c0_10 = arith.constant 0 : index
    %25 = vector.load %arg3[%c2, %c0_10] : memref<4x128xf32, #tpu.memory_space<vmem>>, vector<1x128xf32>
    %26 = vector.broadcast %25 : vector<1x128xf32> to vector<32x128xf32>
    %27 = arith.addf %24, %26 : vector<32x128xf32>
    %c0_11 = arith.constant 0 : index
    %c0_12 = arith.constant 0 : index
    %28 = vector.load %arg4[%c0_11, %c0_12] : memref<32x128xf32, #tpu.memory_space<vmem>>, vector<32x128xf32>
    tpu.vector_store %arg4[%c0_11, %c0_12], %27 {strides = array<i32>} : memref<32x128xf32, #tpu.memory_space<vmem>>, vector<32x128xf32>,
    return
  }
  func.func @transform_0(%arg0: i32) -> (i32, i32) {
    %c0_i32 = arith.constant 0 : i32
    %c0_i32_0 = arith.constant 0 : i32
    return %arg0, %c0_i32 : i32, i32
  }
  func.func @transform_1(%arg0: i32) -> (i32, i32) {
    %c0_i32 = arith.constant 0 : i32
    %c0_i32_0 = arith.constant 0 : i32
    %c0_i32_1 = arith.constant 0 : i32
    return %c0_i32, %c0_i32_0 : i32, i32
  }
  func.func @transform_2(%arg0: i32) -> (i32, i32) {
    %c0_i32 = arith.constant 0 : i32
    %c0_i32_0 = arith.constant 0 : i32
    %c0_i32_1 = arith.constant 0 : i32
    return %c0_i32, %c0_i32_0 : i32, i32
  }
  func.func @transform_3(%arg0: i32) -> (i32, i32) {
    %c0_i32 = arith.constant 0 : i32
    %c0_i32_0 = arith.constant 0 : i32
    return %arg0, %c0_i32 : i32, i32
  }
}

</mosaic_0001>

<bundles_post_ra>
// kernel: tpu_custom_call.1
= control target key start
LH: loop header
LB: loop body
LE: loop exit
PB: predicated region body
PF: predicated region fallthrough
CT: control target
= control target key end

     0   :  { %8 = vsyncpa [#allocation3], 0  ;;  %s514_s0 = inlined_call_operand.hbm [shape: f32[32,128], index: 0, kind: input, shape index: {}]   ;;  %s515_s1 = inlined_call_operand.hbm [shape: f32[128,128], index: 1, kind: input, shape index: {}]   ;;  %s516_s2 = inlined_call_operand.vmem [shape: f32[4,128], index: 2, kind: input, shape index: {}]   ;;  %s517_s3 = inlined_call_operand.hbm [shape: f32[32,128], index: 3, kind: output, shape index: {}]  }
   0x1   :  { %9 = vsyncpa [#allocation6], 0 }
   0x2   :  { %10 = vsyncpa [#allocation4], 0  ;;  %s435_s12 = smov [#allocation2]   ;;  %s363_s16 = scalar_lea.hbm %s514_s0, 512 }
   0x3   :  { %s16_s13 = sshll.u32 %s435_s12, 4  ;;  %p364_p0 = scmp.ne.s32.totalorder %s514_s0, %s363_s16  ;;  %s17_s13 = int_to_ptr.vmem [resolvable:$true] %s16_s13 }
   0x4   :  { %p367_p1 = scmp.lt.u32.totalorder %s363_s16, %s514_s0 }
   0x6   :  { %p369_p2 = pnand %p367_p1, %p364_p0 }
   0x8   :  { %372 = shalt.err (!%p369_p2)
}
   0x9   :  { %s373_s21 = scalar_lea.vmem %s17_s13, 512  ;;  %p378_p4 = scmp.lt.s32.totalorder %s17_s13, %s17_s13 }
   0xa   :  { %p374_p3 = scmp.ne.s32.totalorder %s17_s13, %s373_s21  ;;  %p379_p5 = scmp.lt.s32.totalorder %s373_s21, %s373_s21 }
   0xc   :  { %p380_p6 = por %p379_p5, %p378_p4 }
   0xe   :  { %p381_p7 = pnand %p380_p6, %p374_p3 }
  0x10   :  { %384 = shalt.err (!%p381_p7)
}
  0x11   :  { %s436_s22 = smov 128   ;;  %s437_s23 = smov 8  }
  0x12   :  { %22 = dma.hbm_to_vmem [thread:$0]  %s514_s0, 512, %s17_s13, [#allocation3], %s436_s22, %s436_s22, %s437_s23  }
  0x13   :  { %s438_s26 = smov [#allocation5]   ;;  %s385_s30 = scalar_lea.hbm %s515_s1, 2048 }
  0x14   :  { %s28_s27 = sshll.u32 %s438_s26, 4  ;;  %p386_p8 = scmp.ne.s32.totalorder %s515_s1, %s385_s30  ;;  %s29_s27 = int_to_ptr.vmem [resolvable:$true] %s28_s27 }
  0x15   :  { %p389_p9 = scmp.lt.u32.totalorder %s385_s30, %s515_s1 }
  0x17   :  { %p391_p10 = pnand %p389_p9, %p386_p8 }
  0x19   :  { %394 = shalt.err (!%p391_p10)
}
  0x1a   :  { %s395_s8 = scalar_lea.vmem %s29_s27, 2048  ;;  %p400_p12 = scmp.lt.s32.totalorder %s29_s27, %s29_s27 }
  0x1b   :  { %p396_p11 = scmp.ne.s32.totalorder %s29_s27, %s395_s8  ;;  %p401_p13 = scmp.lt.s32.totalorder %s395_s8, %s395_s8 }
  0x1d   :  { %p402_p0 = por %p401_p13, %p400_p12 }
  0x1f   :  { %p403_p1 = pnand %p402_p0, %p396_p11 }
  0x21   :  { %406 = shalt.err (!%p403_p1)
}
  0x22   :  { %34 = dma.hbm_to_vmem [thread:$0]  %s515_s1, 2048, %s29_s27, [#allocation6], %s436_s22, %s436_s22, %s437_s23  }
  0x23   :  { %429 = dma.done.wait [#allocation3], 512  }
  0x24   :  { %430 = vsyncadd [#allocation3], 4294966784 }
  0x25   :  { %431 = dma.done.wait [#allocation6], 2048  }
  0x26   :  { %432 = vsyncadd [#allocation6], 4294965248  ;;  %v47_v0 = vld [vmem:[#allocation5] sm:$0xff]  ;;  %v48_v1 = vld [vmem:[#allocation5 + $0x8] sm:$0xff]  ;;  %s439_s15 = smov [#allocation7]  }
  0x27   :  { %v49_v2 = vld [vmem:[#allocation5 + $0x10] sm:$0xff]  ;;  %v302_v3 = vpack.c.bf16 %v48_v1, %v47_v0  ;;  %v50_v4 = vld [vmem:[#allocation5 + $0x18] sm:$0xff]  ;;  %v51_v6 = vld [vmem:[#allocation5 + $0x20] sm:$0xff]  ;;  %s228_s16 = sshll.u32 %s439_s15, 4  ;;  %s229_s16 = int_to_ptr.vmem [resolvable:$true] %s228_s16 }
  0x28   :  { %v306_v5 = vpack.c.bf16 %v50_v4, %v49_v2  ;;  %v52_v7 = vld [vmem:[#allocation5 + $0x28] sm:$0xff]  ;;  %v43_v9 = vld [vmem:[#allocation2] sm:$0xff]  ;;  %v45_v10 = vld [vmem:[#allocation2 + $0x10] sm:$0xff]  ;;  %p412_p3 = scmp.lt.s32.totalorder %s229_s16, %s229_s16 }
  0x29   :  { %303 = vmatprep.subr.bf16.mxu0 %v302_v3  ;;  %334 = vmatprep.subr.bf16.mxu1 %v302_v3  ;;  %v310_v8 = vpack.c.bf16 %v52_v7, %v51_v6  ;;  %v53_v11 = vld [vmem:[#allocation5 + $0x30] sm:$0xff]  ;;  %v54_v12 = vld [vmem:[#allocation5 + $0x38] sm:$0xff]  ;;  %v55_v14 = vld [vmem:[#allocation5 + $0x40] sm:$0xff] }
  0x2a   :  { %305 = vmatpush3.bf16.msra.mxu0 %v302_v3  ;;  %342 = vmatpush3.bf16.msra.mxu1 %v302_v3  ;;  %v314_v13 = vpack.c.bf16 %v54_v12, %v53_v11  ;;  %v56_v15 = vld [vmem:[#allocation5 + $0x48] sm:$0xff]  ;;  %v57_v17 = vld [vmem:[#allocation5 + $0x50] sm:$0xff]  ;;  %v58_v18 = vld [vmem:[#allocation5 + $0x58] sm:$0xff] }
  0x2b   :  { %307 = vmatprep.subr.bf16.mxu0 %v306_v5  ;;  %335 = vmatprep.subr.bf16.mxu1 %v306_v5  ;;  %v318_v16 = vpack.c.bf16 %v56_v15, %v55_v14  ;;  %v322_v19 = vpack.c.bf16 %v58_v18, %v57_v17  ;;  %v59_v20 = vld [vmem:[#allocation5 + $0x60] sm:$0xff]  ;;  %v60_v21 = vld [vmem:[#allocation5 + $0x68] sm:$0xff]  ;;  %v61_v23 = vld [vmem:[#allocation5 + $0x70] sm:$0xff] }
  0x2c   :  { %296 = vmatprep.mubr.f32.mxu0 %v43_v9  ;;  %299 = vmatprep.mubr.f32.mxu1 %v45_v10  ;;  %v326_v22 = vpack.c.bf16 %v60_v21, %v59_v20  ;;  %v62_v24 = vld [vmem:[#allocation5 + $0x78] sm:$0xff]  ;;  %v44_v26 = vld [vmem:[#allocation2 + $0x8] sm:$0xff]  ;;  %v241_v36 = vld [vmem:[%s516_s2 + $0x3] ss:$0 sm:$0xff] }
  0x2d   :  { %v330_v25 = vpack.c.bf16 %v62_v24, %v61_v23  ;;  %v46_v27 = vld [vmem:[#allocation2 + $0x18] sm:$0xff]  ;;  %v242_v2 = vld [vmem:[%s516_s2 + $0x1] ss:$0 sm:$0xff]  ;;  %v243_v4 = vld [vmem:[%s516_s2 + $0x2] ss:$0 sm:$0xff]  ;;  %s407_s2 = scalar_lea.vmem %s229_s16, 512 }
  0x2e   :  { %309 = vmatpush3.bf16.msra.mxu0 %v306_v5  ;;  %343 = vmatpush3.bf16.msra.mxu1 %v306_v5  ;;  %p408_p2 = scmp.ne.s32.totalorder %s229_s16, %s407_s2  ;;  %p413_p4 = scmp.lt.s32.totalorder %s407_s2, %s407_s2 }
  0x2f   :  { %311 = vmatprep.subr.bf16.mxu0 %v310_v8  ;;  %336 = vmatprep.subr.bf16.mxu1 %v310_v8 }
  0x30   :  { %p414_p5 = por %p413_p4, %p412_p3 }
  0x32   :  { %313 = vmatpush3.bf16.msra.mxu0 %v310_v8  ;;  %344 = vmatpush3.bf16.msra.mxu1 %v310_v8  ;;  %p415_p6 = pnand %p414_p5, %p408_p2 }
  0x33   :  { %315 = vmatprep.subr.bf16.mxu0 %v314_v13  ;;  %337 = vmatprep.subr.bf16.mxu1 %v314_v13 }
  0x36   :  { %317 = vmatpush3.bf16.msra.mxu0 %v314_v13  ;;  %345 = vmatpush3.bf16.msra.mxu1 %v314_v13 }
  0x37   :  { %319 = vmatprep.subr.bf16.mxu0 %v318_v16  ;;  %338 = vmatprep.subr.bf16.mxu1 %v318_v16 }
  0x3a   :  { %321 = vmatpush3.bf16.msra.mxu0 %v318_v16  ;;  %346 = vmatpush3.bf16.msra.mxu1 %v318_v16 }
  0x3b   :  { %323 = vmatprep.subr.bf16.mxu0 %v322_v19  ;;  %339 = vmatprep.subr.bf16.mxu1 %v322_v19 }
  0x3e   :  { %325 = vmatpush3.bf16.msra.mxu0 %v322_v19  ;;  %347 = vmatpush3.bf16.msra.mxu1 %v322_v19 }
  0x3f   :  { %327 = vmatprep.subr.bf16.mxu0 %v326_v22  ;;  %340 = vmatprep.subr.bf16.mxu1 %v326_v22 }
  0x42   :  { %329 = vmatpush3.bf16.msra.mxu0 %v326_v22  ;;  %348 = vmatpush3.bf16.msra.mxu1 %v326_v22 }
  0x43   :  { %331 = vmatprep.subr.bf16.mxu0 %v330_v25  ;;  %341 = vmatprep.subr.bf16.mxu1 %v330_v25 }
  0x46   :  { %333 = vmatpush3.bf16.msra.mxu0 %v330_v25  ;;  %349 = vmatpush3.bf16.msra.mxu1 %v330_v25 }
  0x49   :  { %297 = vmatmul.mubr.f32.vlgmr.msra.gmra.mrb[0].mxu0 %v44_v26  ;;  %300 = vmatmul.mubr.f32.vlgmr.msra.gmra.mrb[0].mxu1 %v46_v27 }
 0x11c   :  { %v298_v28 = vpop.f32.mrb[0].mxu0  ;;  %v301_v29 = vpop.f32.mrb[0].mxu1 }
 0x11d   :  { %v129_v30 = vpop.f32.mrb[1].mxu0  ;;  %v139_v31 = vpop.f32.mrb[1].mxu1 }
 0x11e   :  { %152 = vadd.xlane.f32.xlu1 %v139_v31  ;;  %148 = vadd.xlane.f32.xlu0 %v129_v30 }
 0x122   :  { %154 = vadd.xlane.f32.xlu1 %v301_v29  ;;  %150 = vadd.xlane.f32.xlu0 %v298_v28 }
 0x1ab   :  { %v153_v32 = vpop.xlane.xlu1 %152  ;;  %v149_v33 = vpop.xlane.xlu0 %148 }
 0x1ac   :  { %v158_v34 = vmul.f32 0.03125, %v153_v32  ;;  %v156_v35 = vmul.f32 0.03125, %v149_v33 }
 0x1ae   :  { %v162_v37 = vsub.f32 %v139_v31, %v158_v34  ;;  %v160_v38 = vsub.f32 %v129_v30, %v156_v35 }
 0x1af   :  { %v155_v39 = vpop.xlane.xlu1 %154  ;;  %v151_v40 = vpop.xlane.xlu0 %150 }
 0x1b0   :  { %v159_v41 = vmul.f32 0.03125, %v155_v39  ;;  %v157_v42 = vmul.f32 0.03125, %v151_v40  ;;  %v169_v43 = vmul.f32 %v241_v36, %v160_v38  ;;  %v171_v47 = vmul.f32 %v241_v36, %v162_v37 }
 0x1b2   :  { %v163_v44 = vsub.f32 %v301_v29, %v159_v41  ;;  %v161_v45 = vsub.f32 %v298_v28, %v157_v42  ;;  %v173_v46 = vmul.f32 %v169_v43, %v169_v43  ;;  %v175_v49 = vmul.f32 %v171_v47, %v171_v47 }
 0x1b4   :  { %177 = vadd.xlane.f32.xlu0 %v173_v46  ;;  %v170_v48 = vmul.f32 %v241_v36, %v161_v45  ;;  %v172_v51 = vmul.f32 %v241_v36, %v163_v44 }
 0x1b6   :  { %v174_v50 = vmul.f32 %v170_v48, %v170_v48  ;;  %v176_v52 = vmul.f32 %v172_v51, %v172_v51 }
 0x1b8   :  { %181 = vadd.xlane.f32.xlu0 %v175_v49  ;;  %179 = vadd.xlane.f32.xlu1 %v174_v50 }
 0x1bc   :  { %183 = vadd.xlane.f32.xlu1 %v176_v52 }
 0x241   :  { %v178_v53 = vpop.xlane.xlu0 %177 }
 0x242   :  { %v185_v54 = vmul.f32 0.03125, %v178_v53 }
 0x244   :  { %v189_v55 = vadd.f32 1e-05, %v185_v54 }
 0x245   :  { %v180_v56 = vpop.xlane.xlu1 %179  ;;  %v182_v57 = vpop.xlane.xlu0 %181 }
 0x246   :  { %355 = vrsqrt.f32 %v189_v55  ;;  %v186_v58 = vmul.f32 0.03125, %v180_v56  ;;  %v187_v59 = vmul.f32 0.03125, %v182_v57 }
 0x248   :  { %v190_v60 = vadd.f32 1e-05, %v186_v58  ;;  %v191_v61 = vadd.f32 1e-05, %v187_v59 }
 0x249   :  { %v184_v62 = vpop.xlane.xlu1 %183 }
 0x24a   :  { %357 = vrsqrt.f32 %v190_v60  ;;  %v188_v63 = vmul.f32 0.03125, %v184_v62 }
 0x24b   :  { %359 = vrsqrt.f32 %v191_v61 }
 0x24c   :  { %v192_v0 = vadd.f32 1e-05, %v188_v63 }
 0x24e   :  { %361 = vrsqrt.f32 %v192_v0 }
 0x250   :  { %v356_v1 = vpop.eup %355 }
 0x251   :  { %v197_v3 = vmul.f32 %v356_v1, %v169_v43 }
 0x253   :  { %v206_v5 = vmul.f32 %v242_v2, %v197_v3 }
 0x254   :  { %v358_v6 = vpop.eup %357 }
 0x255   :  { %v360_v7 = vpop.eup %359  ;;  %v198_v8 = vmul.f32 %v358_v6, %v170_v48  ;;  %v215_v9 = vadd.f32 %v243_v4, %v206_v5 }
 0x256   :  { %v199_v10 = vmul.f32 %v360_v7, %v171_v47 }
 0x257   :  { %v207_v11 = vmul.f32 %v242_v2, %v198_v8  ;;  %219 = vst [vmem:[#allocation7] sm:$0xff] %v215_v9 }
 0x258   :  { %v362_v12 = vpop.eup %361  ;;  %v208_v13 = vmul.f32 %v242_v2, %v199_v10 }
 0x259   :  { %v200_v14 = vmul.f32 %v362_v12, %v172_v51  ;;  %v216_v15 = vadd.f32 %v243_v4, %v207_v11 }
 0x25a   :  { %v217_v16 = vadd.f32 %v243_v4, %v208_v13 }
 0x25b   :  { %v209_v17 = vmul.f32 %v242_v2, %v200_v14  ;;  %220 = vst [vmem:[#allocation7 + $0x8] sm:$0xff] %v216_v15 }
 0x25c   :  { %221 = vst [vmem:[#allocation7 + $0x10] sm:$0xff] %v217_v16 }
 0x25d   :  { %v218_v18 = vadd.f32 %v243_v4, %v209_v17 }
 0x25f   :  { %222 = vst [vmem:[#allocation7 + $0x18] sm:$0xff] %v218_v18 }
 0x260   :  { %418 = shalt.err (!%p415_p6)
}
 0x261   :  { %s419_s19 = scalar_lea.hbm %s517_s3, 512 }
 0x262   :  { %p420_p7 = scmp.ne.s32.totalorder %s517_s3, %s419_s19  ;;  %p423_p8 = scmp.lt.u32.totalorder %s419_s19, %s517_s3 }
 0x264   :  { %p425_p9 = pnand %p423_p8, %p420_p7 }
 0x266   :  { %428 = shalt.err (!%p425_p9)
}
 0x267   :  { %234 = dma.vmem_to_hbm [thread:$0]  %s229_s16, 512, %s517_s3, [#allocation4], %s436_s22, %s436_s22, %s437_s23  }
 0x268   :  { %433 = dma.done.wait [#allocation4], 512  }
 0x269   :  { %434 = vsyncadd [#allocation4], 4294966784 }
 0x26a   :  { %238 = vsyncpa [#allocation3], 1 }
 0x26b   :  { %239 = vsyncpa [#allocation6], 1 }
 0x26c   :  { %240 = vsyncpa [#allocation4], 1 }

</bundles_post_ra>
